<compile_context>
chip_gen: v5e
topology: v5e:2x2
jax: 0.10.0
libtpu: 0.0.40
codegen_flags: <defaults>
</compile_context>

<pallas_src>
import functools

import jax
import jax.numpy as jnp
from jax.experimental import pallas as pl
from jax.experimental.pallas import tpu as pltpu


def _round_up(a, m):
    return (a + m - 1) // m * m


def _vmem_budgets():
    """(working-set budget for tiling, vmem_limit cap) per TPU generation."""
    try:
        cap = int(pltpu.get_tpu_info().vmem_capacity_bytes)
    except Exception:
        cap = 128 << 20
    if cap <= (64 << 20):            # v7x-class: 64 MiB per TensorCore
        return 18 << 20, 40 << 20
    return 40 << 20, 64 << 20        # v5e / v6e: 128 MiB per core


# ---------------------------------------------------------------------------
# Kernel 1: CLIP contrastive loss (single device)
# ---------------------------------------------------------------------------
def _clip_loss_kernel(scale_ref, img_ref, txt_ref, out_ref):
    scale = scale_ref[0]
    img = img_ref[...]                               # (N, D) native dtype (bf16-friendly MXU feed)
    txt = txt_ref[...]
    # Fold the logit scale into ONE operand (O(N*D)) instead of scaling the (N, N) similarity.
    img_s = (img.astype(jnp.float32) * scale).astype(img.dtype)
    # sim[i, j] = scale * <img_i, txt_j>   (contract on D, native-dtype operands, f32 accumulate)
    sim = jax.lax.dot_general(
        img_s, txt, (((1,), (1,)), ((), ())), preferred_element_type=jnp.float32)
    n = sim.shape[0]

    # row-wise (image->text) and column-wise (text->image) logsumexp
    row_m = jnp.max(sim, axis=1, keepdims=True)
    row_lse = row_m + jnp.log(jnp.sum(jnp.exp(sim - row_m), axis=1, keepdims=True))
    # TODO(synk): at large N, flash-tile the (N, N) similarity over txt column blocks (online row-lse,
    # persistent col-lse) and compute the axis-0 stats via a ones-vector matmul / transpose (XLU relief).
    col_m = jnp.max(sim, axis=0, keepdims=True)
    col_lse = col_m + jnp.log(jnp.sum(jnp.exp(sim - col_m), axis=0, keepdims=True))

    # Diagonal sum via O(N*D) elementwise product instead of two (N, N) iotas + select.
    diag_sum = scale * jnp.sum(img.astype(jnp.float32) * txt.astype(jnp.float32))

    # ((sum(row_lse) - sum(diag)) / n + (sum(col_lse) - sum(diag)) / n) / 2
    total = (jnp.sum(row_lse) + jnp.sum(col_lse) - 2.0 * diag_sum) / (2.0 * n)
    out_ref[...] = jnp.zeros_like(out_ref) + total


def _clip_contrastive_loss(image_features, text_features, logit_scale):
    n, d = image_features.shape
    assert text_features.shape == (n, d)
    scale = jnp.asarray(logit_scale, jnp.float32).reshape(1)
    _, limit_cap = _vmem_budgets()
    isz = image_features.dtype.itemsize
    # double-buffered inputs + f32 casts for the diag product + (N, N) sim & exp temporaries
    est = 4 * isz * n * d + 8 * n * d + 5 * 4 * n * n + (2 << 20)
    vmem = int(min(limit_cap, max(16 << 20, est)))
    out = pl.pallas_call(
        _clip_loss_kernel,
        out_shape=jax.ShapeDtypeStruct((1, 1), jnp.float32),
        grid=(1,),
        in_specs=[
            pl.BlockSpec(memory_space=pltpu.MemorySpace.SMEM),   # logit_scale, (1,)
            pl.BlockSpec((n, d), lambda i: (0, 0)),
            pl.BlockSpec((n, d), lambda i: (0, 0)),
        ],
        out_specs=pl.BlockSpec((1, 1), lambda i: (0, 0)),
        compiler_params=pltpu.CompilerParams(
            dimension_semantics=("arbitrary",), vmem_limit_bytes=vmem),
    )(scale, image_features, text_features)
    return out[0, 0]


# ---------------------------------------------------------------------------
# Kernel 2: fused caption cross-entropy + negative-learning loss over token logits
# ---------------------------------------------------------------------------
def _token_losses_kernel(logits_ref, gath_ref, out_ref, *, rows, neg_t):
    i = pl.program_id(0)
    x = logits_ref[...].astype(jnp.float32)          # (TR, V) cast per tile; inputs stay native dtype
    g = gath_ref[...].astype(jnp.float32)            # (TR, TG) = [neg logits | tgt | valid | filler]
    tr = x.shape[0]

    # Ragged final tile: rows beyond R are garbage -> always mask with a select (never multiply).
    ridx = i * tr + jax.lax.broadcasted_iota(jnp.int32, (tr, 1), 0)
    row_ok = ridx < rows                                               # (TR, 1)

    # per-row stable logsumexp, shared by both losses
    m = jnp.max(x, axis=-1, keepdims=True)
    lse = m + jnp.log(jnp.sum(jnp.exp(x - m), axis=-1, keepdims=True))  # (TR, 1)

    tgt = g[:, neg_t:neg_t + 1]                      # pre-gathered target logit      (TR, 1)
    valid = g[:, neg_t + 1:neg_t + 2]                # 1.0 where label != pad_id      (TR, 1)

    cap_p = jnp.sum(jnp.where(row_ok, valid * (lse - tgt), 0.0))
    cnt_p = jnp.sum(jnp.where(row_ok, valid, 0.0))

    # negative learning: -sum(log1p(-p)), p = softmax(logits)[sampled token] (<= 1 on negative lanes)
    lane = jax.lax.broadcasted_iota(jnp.int32, g.shape, 1)
    p = jnp.exp(g - lse)
    neg_p = -jnp.sum(jnp.where(row_ok & (lane < neg_t), jnp.log1p(-p), 0.0))

    # lane-dense per-tile partial sums: rows 0/1/2 of a (3, 128) block
    sub = jax.lax.broadcasted_iota(jnp.int32, (3, 128), 0)
    out_ref[0] = jnp.where(sub == 0, cap_p, jnp.where(sub == 1, cnt_p, neg_p))


def _pick_row_tile(rows, v, tg, itemsize, budget_bytes):
    """Largest row tile (multiple of 16) whose double-buffered inputs + f32 temps fit the budget."""
    per_row = 2 * itemsize * (v + tg) + 2 * 4 * (v + tg)
    tr = int(budget_bytes // per_row)
    tr = max(16, (tr // 16) * 16)
    tr = min(tr, 2048)
    if tr >= rows:
        return rows
    return tr


def _token_losses(logits, labels, neg_gathered, *, pad_id):
    b, s, v = logits.shape
    t = neg_gathered.shape[-1]
    r = b * s
    dt = logits.dtype

    # NOTE: no astype / pad of the big logits tensor -> no extra HBM round trip.
    x = logits.reshape(r, v)
    lbl = labels.reshape(r).astype(jnp.int32)

    # Pre-gather the per-row target logit + valid flag and pack them (plus lane-alignment filler)
    # as extra columns of the gathered-negatives array -> one lane-dense side input.
    tgt = jnp.take_along_axis(x, lbl[:, None], axis=-1)            # (R, 1) native dtype
    valid = (lbl[:, None] != pad_id).astype(dt)                    # (R, 1)
    tg = _round_up(t + 2, 128)
    parts = [neg_gathered.reshape(r, t).astype(dt), tgt, valid]
    if tg > t + 2:
        parts.append(jnp.full((r, tg - t - 2), -1e30, dt))
    gath = jnp.concatenate(parts, axis=-1)                          # (R, TG)

    work_budget, limit_cap = _vmem_budgets()
    tr = _pick_row_tile(r, v, tg, dt.itemsize, work_budget)
    num_tiles = pl.cdiv(r, tr)

    # TODO(synk): for very large vocab V (one row tile no longer fits VMEM), add a second "arbitrary"
    # grid axis over V-chunks with an online logsumexp accumulator.
    # TODO(synk): optionally fuse the negative-token gather in-kernel (take along lanes from the
    # resident (TR, V) tile) to drop the separate (R, T) HBM array.
    per_row = 2 * dt.itemsize * (v + tg) + 2 * 4 * (v + tg)
    vmem = int(min(limit_cap, max(16 << 20, per_row * tr + (4 << 20))))

    kernel = functools.partial(_token_losses_kernel, rows=r, neg_t=t)
    out = pl.pallas_call(
        kernel,
        out_shape=jax.ShapeDtypeStruct((num_tiles, 3, 128), jnp.float32),
        grid=(num_tiles,),
        in_specs=[
            pl.BlockSpec((tr, v), lambda i: (i, 0)),
            pl.BlockSpec((tr, tg), lambda i: (i, 0)),
        ],
        out_specs=pl.BlockSpec((1, 3, 128), lambda i: (i, 0, 0)),
        compiler_params=pltpu.CompilerParams(
            dimension_semantics=("parallel",), vmem_limit_bytes=vmem),
    )(x, gath)
    cap_sum = jnp.sum(out[:, 0, 0])
    cnt = jnp.sum(out[:, 1, 0])
    neg_sum = jnp.sum(out[:, 2, 0])
    return cap_sum, cnt, neg_sum


# ---------------------------------------------------------------------------
# Negative-token sampling (plain JAX: top-k + uniform sampling without replacement)
# ---------------------------------------------------------------------------
def _sample_negative_tokens(key, logits, targets, tokens_num, token_factor):
    b, s, v = logits.shape
    pool = tokens_num * token_factor
    assert pool <= v, "tokens_num * token_factor must not exceed vocab size"
    # mask out every token id that appears anywhere in this batch element's targets
    tgt_mask = jax.nn.one_hot(targets, v, dtype=jnp.float32).sum(axis=1) > 0     # (B, V)
    masked = jnp.where(tgt_mask[:, None, :], -jnp.inf, logits)
    _, top_idx = jax.lax.top_k(masked, pool)                                     # (B, S, pool)
    # uniformly sample `tokens_num` of the pool without replacement, per position
    noise = jax.random.uniform(key, (b, s, pool))
    pick = jnp.argsort(noise, axis=-1)[..., :tokens_num]                          # (B, S, T)
    return jnp.take_along_axis(top_idx, pick, axis=-1)                            # (B, S, T)


# ---------------------------------------------------------------------------
# Module-equivalent wrapper (world_size == 1)
# ---------------------------------------------------------------------------
def positive_negative_coca_loss(image_features, text_features, logits, labels,
                                logit_scale, targets, sample_key, *,
                                caption_loss_weight, clip_loss_weight,
                                negative_loss_weight, pad_id=0,
                                tokens_num=8000, token_factor=4):
    if clip_loss_weight:
        clip_loss = clip_loss_weight * _clip_contrastive_loss(
            image_features, text_features, logit_scale)
    else:
        clip_loss = jnp.float32(0.0)

    sampled = _sample_negative_tokens(sample_key, logits, targets, tokens_num, token_factor)
    neg_gathered = jnp.take_along_axis(logits, sampled, axis=-1)                 # (B, S, T)

    cap_sum, cap_cnt, neg_sum = _token_losses(logits, labels, neg_gathered, pad_id=pad_id)
    caption_loss = caption_loss_weight * cap_sum / jnp.maximum(cap_cnt, 1.0)
    negative_loss = negative_loss_weight * neg_sum
    return clip_loss, caption_loss, negative_loss


# ---------------------------------------------------------------------------
# Pure-JAX reference (uses the same sampled negative-token indices)
# ---------------------------------------------------------------------------
def _reference(image_features, text_features, logits, labels, logit_scale,
               targets, sample_key, *, caption_loss_weight, clip_loss_weight,
               negative_loss_weight, pad_id, tokens_num, token_factor):
    x = image_features.astype(jnp.float32)
    y = text_features.astype(jnp.float32)
    sim = logit_scale * (x @ y.T)
    n = sim.shape[0]
    idx = jnp.arange(n)
    lp_i = jax.nn.log_softmax(sim, axis=-1)
    lp_t = jax.nn.log_softmax(sim.T, axis=-1)
    clip = -(lp_i[idx, idx].mean() + lp_t[idx, idx].mean()) / 2.0
    clip = clip_loss_weight * clip if clip_loss_weight else jnp.float32(0.0)

    logp = jax.nn.log_softmax(logits.astype(jnp.float32), axis=-1)
    tgt_logp = jnp.take_along_axis(logp, labels[..., None].astype(jnp.int32), axis=-1)[..., 0]
    valid = (labels != pad_id).astype(jnp.float32)
    cap = caption_loss_weight * (-(tgt_logp * valid).sum() / jnp.maximum(valid.sum(), 1.0))

    sampled = _sample_negative_tokens(sample_key, logits, targets, tokens_num, token_factor)
    probs = jax.nn.softmax(logits.astype(jnp.float32), axis=-1)
    sp = jnp.take_along_axis(probs, sampled, axis=-1)
    neg = negative_loss_weight * (-jnp.sum(jnp.log(1.0 - sp)))
    return clip, cap, neg


if __name__ == "__main__":
    key = jax.random.PRNGKey(0)
    k_img, k_txt, k_log, k_lbl, k_neg = jax.random.split(key, 5)

    # SMALL shapes consistent with the module: contrastive batch N, embed D,
    # caption batch B, sequence S, vocab V.
    N, D = 8, 128
    B, S, V = 2, 8, 128
    tokens_num, token_factor = 4, 2
    pad_id = 0
    caption_w, clip_w, negative_w = 2.0, 1.0, 0.5
    logit_scale = 14.285714  # ~ 1 / 0.07

    image_features = jax.random.normal(k_img, (N, D), jnp.float32)
    text_features = jax.random.normal(k_txt, (N, D), jnp.float32)
    image_features = image_features / jnp.linalg.norm(image_features, axis=-1, keepdims=True)
    text_features = text_features / jnp.linalg.norm(text_features, axis=-1, keepdims=True)

    logits = jax.random.normal(k_log, (B, S, V), jnp.float32)
    labels = jax.random.randint(k_lbl, (B, S), 1, V).astype(jnp.int32)
    labels = labels.at[:, -2:].set(pad_id)       # some padded positions (ignored by caption loss)
    targets = labels

    got = positive_negative_coca_loss(
        image_features, text_features, logits, labels, logit_scale, targets, k_neg,
        caption_loss_weight=caption_w, clip_loss_weight=clip_w,
        negative_loss_weight=negative_w, pad_id=pad_id,
        tokens_num=tokens_num, token_factor=token_factor)
    got = jax.block_until_ready(got)

    want = _reference(
        image_features, text_features, logits, labels, logit_scale, targets, k_neg,
        caption_loss_weight=caption_w, clip_loss_weight=clip_w,
        negative_loss_weight=negative_w, pad_id=pad_id,
        tokens_num=tokens_num, token_factor=token_factor)

    for name, g, w in zip(("clip_loss", "caption_loss", "negative_loss"), got, want):
        assert jnp.allclose(g, w, rtol=3e-4, atol=3e-4), (name, g, w)

    print("KERNEL_OK")
</pallas_src>

<mosaic_0001>
module attributes {stable_mosaic.version = 11 : i64} {
  func.func @_clip_loss_kernel(%arg0: i32, %arg1: memref<1xf32, #tpu.memory_space<smem>>, %arg2: memref<8x128xf32, #tpu.memory_space<vmem>>, %arg3: memref<8x128xf32, #tpu.memory_space<vmem>>, %arg4: memref<1x1xf32, #tpu.memory_space<vmem>>) attributes {dimension_semantics = [#tpu.dimension_semantics<arbitrary>], iteration_bounds = array<i64: 1>, scalar_prefetch = 0 : i64, scratch_operands = 0 : i64, tpu.core_type = #tpu.core_type<tc>, window_params = [{transform_indices = @transform_0, window_bounds = array<i64: 1>}, {pipeline_mode = #tpu.pipeline_mode<synchronous>, transform_indices = @transform_1, window_bounds = array<i64: 8, 128>}, {pipeline_mode = #tpu.pipeline_mode<synchronous>, transform_indices = @transform_2, window_bounds = array<i64: 8, 128>}, {pipeline_mode = #tpu.pipeline_mode<synchronous>, transform_indices = @transform_3, window_bounds = array<i64: 1, 1>}]} {
    %c0 = arith.constant 0 : index
    %0 = memref.load %arg1[%c0] : memref<1xf32, #tpu.memory_space<smem>>
    %c0_0 = arith.constant 0 : index
    %c0_1 = arith.constant 0 : index
    %1 = vector.load %arg2[%c0_0, %c0_1] : memref<8x128xf32, #tpu.memory_space<vmem>>, vector<8x128xf32>
    %c0_2 = arith.constant 0 : index
    %c0_3 = arith.constant 0 : index
    %2 = vector.load %arg3[%c0_2, %c0_3] : memref<8x128xf32, #tpu.memory_space<vmem>>, vector<8x128xf32>
    %3 = vector.broadcast %0 : f32 to vector<8x128xf32>
    %4 = arith.mulf %1, %3 : vector<8x128xf32>
    %cst = arith.constant dense<0.000000e+00> : vector<8x8xf32>
    %5 = tpu.matmul %4, %2, %cst {dimension_numbers = #tpu.dot_dimension_numbers<[1], [1], [0], [0], [0, 0, 1, 0], [], []>} : vector<8x128xf32>, vector<8x128xf32>, vector<8x8xf32> -> vector<8x8xf32>
    %cst_4 = arith.constant dense<0xFF800000> : vector<8xf32>
    %6 = vector.multi_reduction <maximumf>, %5, %cst_4 [1] : vector<8x8xf32> to vector<8xf32>
    %7 = vector.shape_cast %6 : vector<8xf32> to vector<8x1xf32>
    %8 = vector.broadcast %7 : vector<8x1xf32> to vector<8x8xf32>
    %9 = arith.subf %5, %8 : vector<8x8xf32>
    %10 = math.exp %9 : vector<8x8xf32>
    %cst_5 = arith.constant dense<0.000000e+00> : vector<8xf32>
    %11 = vector.multi_reduction <add>, %10, %cst_5 [1] : vector<8x8xf32> to vector<8xf32>
    %12 = vector.shape_cast %11 : vector<8xf32> to vector<8x1xf32>
    %13 = math.log %12 : vector<8x1xf32>
    %14 = arith.addf %7, %13 : vector<8x1xf32>
    %cst_6 = arith.constant dense<0xFF800000> : vector<8xf32>
    %15 = vector.multi_reduction <maximumf>, %5, %cst_6 [0] : vector<8x8xf32> to vector<8xf32>
    %16 = vector.shape_cast %15 : vector<8xf32> to vector<1x8xf32>
    %17 = vector.broadcast %16 : vector<1x8xf32> to vector<8x8xf32>
    %18 = arith.subf %5, %17 : vector<8x8xf32>
    %19 = math.exp %18 : vector<8x8xf32>
    %cst_7 = arith.constant dense<0.000000e+00> : vector<8xf32>
    %20 = vector.multi_reduction <add>, %19, %cst_7 [0] : vector<8x8xf32> to vector<8xf32>
    %21 = vector.shape_cast %20 : vector<8xf32> to vector<1x8xf32>
    %22 = math.log %21 : vector<1x8xf32>
    %23 = arith.addf %16, %22 : vector<1x8xf32>
    %24 = arith.mulf %1, %2 : vector<8x128xf32>
    %25 = vector.shape_cast %24 : vector<8x128xf32> to vector<1x8x128xf32>
    %cst_8 = arith.constant dense<0.000000e+00> : vector<1xf32>
    %26 = vector.multi_reduction <add>, %25, %cst_8 [1, 2] : vector<1x8x128xf32> to vector<1xf32>
    %27 = vector.shape_cast %26 : vector<1xf32> to vector<1x1x1xf32>
    %28 = vector.extract %27[0, 0, 0] : f32 from vector<1x1x1xf32>
    %29 = arith.mulf %0, %28 : f32
    %30 = vector.shape_cast %14 : vector<8x1xf32> to vector<1x8x1xf32>
    %cst_9 = arith.constant dense<0.000000e+00> : vector<1xf32>
    %31 = vector.multi_reduction <add>, %30, %cst_9 [1, 2] : vector<1x8x1xf32> to vector<1xf32>
    %32 = vector.shape_cast %31 : vector<1xf32> to vector<1x1x1xf32>
    %33 = vector.extract %32[0, 0, 0] : f32 from vector<1x1x1xf32>
    %34 = vector.shape_cast %23 : vector<1x8xf32> to vector<1x1x8xf32>
    %cst_10 = arith.constant dense<0.000000e+00> : vector<1xf32>
    %35 = vector.multi_reduction <add>, %34, %cst_10 [1, 2] : vector<1x1x8xf32> to vector<1xf32>
    %36 = vector.shape_cast %35 : vector<1xf32> to vector<1x1x1xf32>
    %37 = vector.extract %36[0, 0, 0] : f32 from vector<1x1x1xf32>
    %38 = arith.addf %33, %37 : f32
    %cst_11 = arith.constant 2.000000e+00 : f32
    %39 = arith.mulf %cst_11, %29 : f32
    %40 = arith.subf %38, %39 : f32
    %cst_12 = arith.constant 1.600000e+01 : f32
    %41 = arith.divf %40, %cst_12 : f32
    %cst_13 = arith.constant 0.000000e+00 : f32
    %42 = vector.broadcast %cst_13 : f32 to vector<1x1xf32>
    %43 = vector.broadcast %41 : f32 to vector<1x1xf32>
    %44 = arith.addf %42, %43 : vector<1x1xf32>
    %c0_14 = arith.constant 0 : index
    %c0_15 = arith.constant 0 : index
    %45 = vector.load %arg4[%c0_14, %c0_15] : memref<1x1xf32, #tpu.memory_space<vmem>>, vector<1x1xf32>
    tpu.vector_store %arg4[%c0_14, %c0_15], %44 {strides = array<i32>} : memref<1x1xf32, #tpu.memory_space<vmem>>, vector<1x1xf32>,
    return
  }
  func.func @transform_0(%arg0: i32) -> i32 {
    %c0_i32 = arith.constant 0 : i32
    %c0_i32_0 = arith.constant 0 : i32
    return %c0_i32 : i32
  }
  func.func @transform_1(%arg0: i32) -> (i32, i32) {
    %c0_i32 = arith.constant 0 : i32
    %c0_i32_0 = arith.constant 0 : i32
    %c0_i32_1 = arith.constant 0 : i32
    return %c0_i32, %c0_i32_0 : i32, i32
  }
  func.func @transform_2(%arg0: i32) -> (i32, i32) {
    %c0_i32 = arith.constant 0 : i32
    %c0_i32_0 = arith.constant 0 : i32
    %c0_i32_1 = arith.constant 0 : i32
    return %c0_i32, %c0_i32_0 : i32, i32
  }
  func.func @transform_3(%arg0: i32) -> (i32, i32) {
    %c0_i32 = arith.constant 0 : i32
    %c0_i32_0 = arith.constant 0 : i32
    %c0_i32_1 = arith.constant 0 : i32
    return %c0_i32, %c0_i32_0 : i32, i32
  }
}

</mosaic_0001>

<bundles_post_ra>
// kernel: tpu_custom_call.1
= control target key start
LH: loop header
LB: loop body
LE: loop exit
PB: predicated region body
PF: predicated region fallthrough
CT: control target
= control target key end

     0   :  { %9 = vsyncpa [#allocation4], 0  ;;  %s310_s0 = inlined_call_operand.<no memory space> [shape: f32[1], index: 0, kind: input, shape index: {}]   ;;  %s311_s1 = inlined_call_operand.hbm [shape: f32[8,128], index: 1, kind: input, shape index: {}]   ;;  %s312_s2 = inlined_call_operand.hbm [shape: f32[8,128], index: 2, kind: input, shape index: {}]   ;;  %s313_s3 = inlined_call_operand.hbm [shape: f32[1,1], index: 3, kind: output, shape index: {}]  }
   0x1   :  { %10 = vsyncpa [#allocation7], 0 }
   0x2   :  { %11 = vsyncpa [#allocation5], 0  ;;  %s19_s14 = sshll.u32 %s311_s1, 4  ;;  %s268_s15 = smov [#allocation3]   ;;  %s20_s14 = int_to_ptr.hbm [resolvable:$true] %s19_s14 }
   0x3   :  { %s21_s16 = sshll.u32 %s268_s15, 4  ;;  %s30_s19 = sshll.u32 %s312_s2, 4  ;;  %s22_s16 = int_to_ptr.vmem [resolvable:$true] %s21_s16  ;;  %s31_s19 = int_to_ptr.hbm [resolvable:$true] %s30_s19 }
   0x4   :  { %24 = dma.hbm_to_vmem [thread:$0]  %s20_s14, 128, %s22_s16, [#allocation4]  }
   0x5   :  { %s269_s20 = smov [#allocation6]  }
   0x6   :  { %s32_s21 = sshll.u32 %s269_s20, 4  ;;  %s33_s21 = int_to_ptr.vmem [resolvable:$true] %s32_s21 }
   0x7   :  { %35 = dma.hbm_to_vmem [thread:$0]  %s31_s19, 128, %s33_s21, [#allocation7]  }
   0x8   :  { %262 = dma.done.wait [#allocation4], 128  }
   0x9   :  { %263 = vsyncadd [#allocation4], 4294967168 }
   0xa   :  { %264 = dma.done.wait [#allocation7], 128  }
   0xb   :  { %265 = vsyncadd [#allocation7], 4294967168  ;;  %v47_v0 = vstv %s310_s0  ;;  %v46_v1 = vld [vmem:[#allocation6] sm:$0xff]  ;;  %v45_v2 = vld [vmem:[#allocation3] sm:$0xff]  ;;  %vm69_vm0 = vcmask 64512   ;;  %vm123_vm1 = vcmask 57344  }
   0xc   :  { %64 = vmatpush.xpose.msra.mxu0 %v46_v1  ;;  %v48_v3 = vmul.f32 %v47_v0, %v45_v2  ;;  %v101_v31 = vmul.f32 %v46_v1, %v45_v2  ;;  %vm112_vm2 = vcmask 7168   ;;  %v270_v44 = vmov 16.0   ;;  %s271_s4 = smov [#allocation8]   ;;  %s157_s9 = sshll.u32 %s313_s3, 4  ;;  %s158_s9 = int_to_ptr.hbm [resolvable:$true] %s157_s9 }
   0xd   :  { %s155_s5 = sshll.u32 %s271_s4, 4  ;;  %vm148_vm4 = vcmask 0   ;;  %s156_s5 = int_to_ptr.vmem [resolvable:$true] %s155_s5 }
   0xe   :  { %102 = vadd.xlane.f32.xlu1 %v101_v31 }
   0xf   :  { %65 = vmatmul.f32.vlgmr.msra.gmra.mxu0 %v48_v3 }
  0x81   :  { %v103_v37 = vpop.xlane.xlu1 %102 }
  0x82   :  { %v104_v38 = vrot.slane %v103_v37, 4 }
  0x84   :  { %v105_v39 = vadd.f32 %v104_v38, %v103_v37 }
  0x86   :  { %v106_v40 = vrot.slane %v105_v39, 2 }
  0x88   :  { %v107_v41 = vadd.f32 %v106_v40, %v105_v39 }
  0x8a   :  { %v108_v42 = vrot.slane %v107_v41, 1 }
  0x8c   :  { %v66_v4 = vpop.f32.mrf.mxu0  ;;  %v109_v43 = vadd.f32 %v108_v42, %v107_v41 }
  0x8d   :  { %v70_v5 = vsel %vm69_vm0, %v66_v4, -inf }
  0x8e   :  { %v82_v6 = vrot.slane %v70_v5, 4  ;;  %71 = vmax.xlane.f32.xlu0 %v70_v5  ;;  %168 = vpush %v109_v43 }
  0x90   :  { %v83_v7 = vmax.f32 %v70_v5, %v82_v6 }
  0x92   :  { %v84_v8 = vrot.slane %v83_v7, 2 }
  0x94   :  { %v85_v9 = vmax.f32 %v83_v7, %v84_v8 }
  0x96   :  { %v86_v10 = vrot.slane %v85_v9, 1 }
  0x98   :  { %v87_v11 = vmax.f32 %v85_v9, %v86_v10 }
  0x9a   :  { %v88_v12 = vsub.f32 %v66_v4, %v87_v11 }
  0x9c   :  { %v89_v13 = vmul.f32 1.442695, %v88_v12 }
  0x9e   :  { %180 = vpow2.f32 %v89_v13 }
  0xa4   :  { %v181_v14 = vpop.eup %180 }
  0xa5   :  { %v91_v15 = vsel %vm69_vm0, %v181_v14, 0.0 }
  0xa6   :  { %v92_v16 = vrot.slane %v91_v15, 4 }
  0xa8   :  { %v93_v17 = vadd.f32 %v92_v16, %v91_v15 }
  0xaa   :  { %v94_v18 = vrot.slane %v93_v17, 2 }
  0xac   :  { %v95_v19 = vadd.f32 %v94_v18, %v93_v17 }
  0xae   :  { %v96_v20 = vrot.slane %v95_v19, 1 }
  0xb0   :  { %v97_v21 = vadd.f32 %v96_v20, %v95_v19 }
  0xb2   :  { %182 = vlog2.f32 %v97_v21 }
  0xb8   :  { %v183_v22 = vpop.eup %182 }
  0xb9   :  { %v99_v23 = vmul.f32 0.6931472, %v183_v22 }
  0xbb   :  { %v100_v24 = vadd.f32 %v99_v23, %v87_v11 }
  0xbd   :  { %v124_v25 = vsel %vm123_vm1, %v100_v24, 0.0 }
  0xbe   :  { %125 = vadd.xlane.f32.xlu2 %v124_v25 }
  0xbf   :  { %s169_s2 = spop %168 }
  0xc0   :  { %s111_s25 = smul.f32 %s169_s2, %s310_s0 }
  0xc2   :  { %s135_s28 = smul.f32 2.0, %s111_s25 }
 0x101   :  { %v72_v26 = vpop.xlane.xlu0 %71 }
 0x102   :  { %v73_v27 = vsub.f32 %v66_v4, %v72_v26 }
 0x104   :  { %v74_v28 = vmul.f32 1.442695, %v73_v27 }
 0x106   :  { %184 = vpow2.f32 %v74_v28 }
 0x10c   :  { %v185_v29 = vpop.eup %184 }
 0x10d   :  { %v76_v30 = vsel %vm69_vm0, %v185_v29, 0.0 }
 0x10e   :  { %77 = vadd.xlane.f32.xlu0 %v76_v30 }
 0x131   :  { %v126_v45 = vpop.xlane.xlu2 %125 }
 0x132   :  { %v127_v46 = vrot.slane %v126_v45, 4 }
 0x134   :  { %v128_v48 = vadd.f32 %v127_v46, %v126_v45 }
 0x136   :  { %v129_v50 = vrot.slane %v128_v48, 2 }
 0x138   :  { %v130_v55 = vadd.f32 %v129_v50, %v128_v48 }
 0x13a   :  { %v131_v59 = vrot.slane %v130_v55, 1 }
 0x13c   :  { %v132_v63 = vadd.f32 %v131_v59, %v130_v55 }
 0x181   :  { %v78_v32 = vpop.xlane.xlu0 %77 }
 0x182   :  { %186 = vlog2.f32 %v78_v32 }
 0x183   :  { %188 = vrcp.f32 %v270_v44 }
 0x188   :  { %v187_v33 = vpop.eup %186 }
 0x189   :  { %v80_v34 = vmul.f32 0.6931472, %v187_v33  ;;  %v189_v47 = vpop.eup %188 }
 0x18a   :  { %v138_v49 = vmul.f32 16.0, %v189_v47  ;;  %vm142_vm3 = vweird.f32 %v189_v47 }
 0x18b   :  { %v81_v35 = vadd.f32 %v80_v34, %v72_v26 }
 0x18c   :  { %v139_v52 = vsub.f32 1.0, %v138_v49 }
 0x18d   :  { %v113_v36 = vsel %vm112_vm2, %v81_v35, 0.0 }
 0x18e   :  { %114 = vadd.xlane.f32.xlu1 %v113_v36  ;;  %v140_v56 = vmul.f32 %v189_v47, %v139_v52 }
 0x190   :  { %v141_v60 = vadd.f32 %v189_v47, %v140_v56 }
 0x192   :  { %v143_v0 = vsel %vm142_vm3, %v189_v47, %v141_v60 }
 0x201   :  { %v115_v51 = vpop.xlane.xlu1 %114 }
 0x202   :  { %v116_v53 = vrot.slane %v115_v51, 4 }
 0x204   :  { %v117_v54 = vadd.f32 %v116_v53, %v115_v51 }
 0x206   :  { %v118_v57 = vrot.slane %v117_v54, 2 }
 0x208   :  { %v119_v58 = vadd.f32 %v118_v57, %v117_v54 }
 0x20a   :  { %v120_v61 = vrot.slane %v119_v58, 1 }
 0x20c   :  { %v121_v62 = vadd.f32 %v120_v61, %v119_v58 }
 0x20e   :  { %170 = vpush %v121_v62 }
 0x20f   :  { %172 = vpush %v132_v63 }
 0x210   :  { %174 = vpush %v143_v0 }
 0x23f   :  { %s171_s26 = spop %170 }
 0x240   :  { %s173_s27 = spop %172 }
 0x241   :  { %s134_s29 = sadd.f32 %s173_s27, %s171_s26  ;;  %s175_s30 = spop %174 }
 0x243   :  { %s136_s6 = ssub.f32 %s134_s29, %s135_s28 }
 0x245   :  { %s145_s10 = smul.f32 %s175_s30, %s136_s6 }
 0x247   :  { %v146_v1 = vstv %s145_s10 }
 0x248   :  { %149 = vst.msk [vmem:[#allocation8] sm:$0x1] %vm148_vm4, %v146_v1 }
 0x249   :  { %160 = dma.vmem_to_hbm [thread:$0]  %s156_s5, 16, %s158_s9, [#allocation5]  }
 0x24a   :  { %266 = dma.done.wait [#allocation5], 16  }
 0x24b   :  { %267 = vsyncadd [#allocation5], 4294967280 }
 0x24c   :  { %165 = vsyncpa [#allocation4], 1 }
 0x24d   :  { %166 = vsyncpa [#allocation7], 1 }
 0x24e   :  { %167 = vsyncpa [#allocation5], 1 }

</bundles_post_ra>
